<compile_context>
chip_gen: v7x
topology: tpu7x:2x2x1
jax: 0.10.0
libtpu: 0.0.40
codegen_flags: <defaults>
</compile_context>

<pallas_src>
import jax
import jax.numpy as jnp
from jax.experimental import pallas as pl
from jax.experimental.pallas import tpu as pltpu

STEERING_RANGE = (-0.8, 0.8)
THROTTLE_RANGE = (0.6, 1.0)
HIDDEN = 256
HEAD_PAD = 128  # lane-dense padded width for the output head


def _round_up(x, m):
    return (x + m - 1) // m * m


def actor_kernel(x_ref, w1_ref, b1_ref, w2_ref, b2_ref, w3_ref, b3_ref, out_ref):
    # x / weights are bf16 (MXU inputs); accumulate + elementwise in f32.
    x = x_ref[...]

    a = jnp.dot(x, w1_ref[...], preferred_element_type=jnp.float32) + b1_ref[...]
    a = jnp.maximum(a, 0.0).astype(jnp.bfloat16)

    a = jnp.dot(a, w2_ref[...], preferred_element_type=jnp.float32) + b2_ref[...]
    a = jnp.maximum(a, 0.0).astype(jnp.bfloat16)

    raw = jnp.dot(a, w3_ref[...], preferred_element_type=jnp.float32) + b3_ref[...]
    raw = jnp.tanh(raw)  # f32, (tm, HEAD_PAD)

    s_lo, s_hi = STEERING_RANGE
    t_lo, t_hi = THROTTLE_RANGE

    # Whole-tile transforms + lane select (no width-1 slices, no lane concat).
    steering_full = raw * ((s_hi - s_lo) * 0.5) + ((s_lo + s_hi) * 0.5)
    throttle_full = jax.nn.sigmoid(raw) * (t_hi - t_lo) + t_lo
    lane = jax.lax.broadcasted_iota(jnp.int32, raw.shape, dimension=1)
    out_ref[...] = jnp.where(lane == 0, steering_full, throttle_full)


def actor_forward(state, params, *, tm=256):
    """state: [B, state_dim] f32 -> [B, action_dim] f32 (steering, throttle)."""
    w1, b1, w2, b2, w3, b3 = params
    B, sd = state.shape
    action_dim = w3.shape[1]

    # Batch tile: at least 8 rows (sublane granularity), at most `tm`.
    tm = min(tm, _round_up(B, 8))
    b_pad = _round_up(B, tm)

    x = state.astype(jnp.bfloat16)
    if b_pad != B:
        x = jnp.pad(x, ((0, b_pad - B), (0, 0)))

    # Pad the head to a full 128-lane tile (zeros in lanes action_dim..127) so
    # the last matmul / output store are unmasked, lane-dense operations.
    w3p = jnp.zeros((w3.shape[0], HEAD_PAD), w3.dtype).at[:, :action_dim].set(w3)
    b3p = jnp.zeros((1, HEAD_PAD), b3.dtype).at[:, :action_dim].set(b3)

    w1b = w1.astype(jnp.bfloat16)
    w2b = w2.astype(jnp.bfloat16)
    w3b = w3p.astype(jnp.bfloat16)

    vmem = pltpu.MemorySpace.VMEM
    const = lambda i: (0, 0)

    out = pl.pallas_call(
        actor_kernel,
        out_shape=jax.ShapeDtypeStruct((b_pad, HEAD_PAD), jnp.float32),
        grid=(b_pad // tm,),
        in_specs=[
            pl.BlockSpec((tm, sd), lambda i: (i, 0), memory_space=vmem),
            pl.BlockSpec((sd, HIDDEN), const, memory_space=vmem),
            pl.BlockSpec((1, HIDDEN), const, memory_space=vmem),
            pl.BlockSpec((HIDDEN, HIDDEN), const, memory_space=vmem),
            pl.BlockSpec((1, HIDDEN), const, memory_space=vmem),
            pl.BlockSpec((HIDDEN, HEAD_PAD), const, memory_space=vmem),
            pl.BlockSpec((1, HEAD_PAD), const, memory_space=vmem),
        ],
        out_specs=pl.BlockSpec((tm, HEAD_PAD), lambda i: (i, 0), memory_space=vmem),
        compiler_params=pltpu.CompilerParams(
            dimension_semantics=("parallel",)),
    )(x, w1b, b1, w2b, b2, w3b, b3p)

    return out[:B, :action_dim]


def init_actor_params(key, state_dim, action_dim):
    """Deterministic init mimicking PyTorch nn.Linear default U[-1/sqrt(fan_in), 1/sqrt(fan_in)]."""
    ks = jax.random.split(key, 6)

    def linear(kw, kb, fan_in, fan_out):
        bound = 1.0 / jnp.sqrt(jnp.float32(fan_in))
        w = jax.random.uniform(kw, (fan_in, fan_out), jnp.float32, -bound, bound)
        b = jax.random.uniform(kb, (1, fan_out), jnp.float32, -bound, bound)
        return w, b

    w1, b1 = linear(ks[0], ks[1], state_dim, HIDDEN)
    w2, b2 = linear(ks[2], ks[3], HIDDEN, HIDDEN)
    w3, b3 = linear(ks[4], ks[5], HIDDEN, action_dim)
    return (w1, b1, w2, b2, w3, b3)


def actor_forward_ref(state, params):
    """Pure-JAX reference replicating the kernel's bf16-matmul / f32-accumulate path."""
    w1, b1, w2, b2, w3, b3 = params
    x = state.astype(jnp.bfloat16)
    a = jnp.dot(x, w1.astype(jnp.bfloat16), preferred_element_type=jnp.float32) + b1
    a = jnp.maximum(a, 0.0).astype(jnp.bfloat16)
    a = jnp.dot(a, w2.astype(jnp.bfloat16), preferred_element_type=jnp.float32) + b2
    a = jnp.maximum(a, 0.0).astype(jnp.bfloat16)
    raw = jnp.tanh(
        jnp.dot(a, w3.astype(jnp.bfloat16), preferred_element_type=jnp.float32) + b3)
    s_lo, s_hi = STEERING_RANGE
    t_lo, t_hi = THROTTLE_RANGE
    steering = raw[:, 0] * ((s_hi - s_lo) / 2.0) + ((s_lo + s_hi) / 2.0)
    throttle = jax.nn.sigmoid(raw[:, 1]) * (t_hi - t_lo) + t_lo
    return jnp.stack([steering, throttle], axis=1)


if __name__ == "__main__":
    key = jax.random.PRNGKey(0)
    k_state, k_params, k_state2 = jax.random.split(key, 3)

    batch = 8
    state_dim = 16
    action_dim = 2

    state = jax.random.normal(k_state, (batch, state_dim), jnp.float32)
    params = init_actor_params(k_params, state_dim, action_dim)

    out = actor_forward(state, params)
    out = jax.block_until_ready(out)
    ref = actor_forward_ref(state, params)
    assert out.shape == (batch, action_dim), out.shape
    assert jnp.allclose(out, ref, atol=1e-3, rtol=1e-3), (out, ref)

    # Exercise the batch-padding / grid path with a non-multiple-of-8 batch.
    batch2 = 20
    state2 = jax.random.normal(k_state2, (batch2, state_dim), jnp.float32)
    out2 = jax.block_until_ready(actor_forward(state2, params))
    ref2 = actor_forward_ref(state2, params)
    assert out2.shape == (batch2, action_dim), out2.shape
    assert jnp.allclose(out2, ref2, atol=1e-3, rtol=1e-3), (out2, ref2)

    print("KERNEL_OK")
</pallas_src>

<mosaic_0001>
module attributes {stable_mosaic.version = 11 : i64} {
  func.func @actor_kernel(%arg0: i32, %arg1: memref<8x16xbf16, #tpu.memory_space<vmem>>, %arg2: memref<16x256xbf16, #tpu.memory_space<vmem>>, %arg3: memref<1x256xf32, #tpu.memory_space<vmem>>, %arg4: memref<256x256xbf16, #tpu.memory_space<vmem>>, %arg5: memref<1x256xf32, #tpu.memory_space<vmem>>, %arg6: memref<256x128xbf16, #tpu.memory_space<vmem>>, %arg7: memref<1x128xf32, #tpu.memory_space<vmem>>, %arg8: memref<8x128xf32, #tpu.memory_space<vmem>>) attributes {dimension_semantics = [#tpu.dimension_semantics<parallel>], iteration_bounds = array<i64: 1>, scalar_prefetch = 0 : i64, scratch_operands = 0 : i64, tpu.core_type = #tpu.core_type<tc>, window_params = [{transform_indices = @transform_0, window_bounds = array<i64: 8, 16>}, {pipeline_mode = #tpu.pipeline_mode<synchronous>, transform_indices = @transform_1, window_bounds = array<i64: 16, 256>}, {pipeline_mode = #tpu.pipeline_mode<synchronous>, transform_indices = @transform_2, window_bounds = array<i64: 1, 256>}, {pipeline_mode = #tpu.pipeline_mode<synchronous>, transform_indices = @transform_3, window_bounds = array<i64: 256, 256>}, {pipeline_mode = #tpu.pipeline_mode<synchronous>, transform_indices = @transform_4, window_bounds = array<i64: 1, 256>}, {pipeline_mode = #tpu.pipeline_mode<synchronous>, transform_indices = @transform_5, window_bounds = array<i64: 256, 128>}, {pipeline_mode = #tpu.pipeline_mode<synchronous>, transform_indices = @transform_6, window_bounds = array<i64: 1, 128>}, {transform_indices = @transform_7, window_bounds = array<i64: 8, 128>}]} {
    %c0 = arith.constant 0 : index
    %c0_0 = arith.constant 0 : index
    %0 = vector.load %arg1[%c0, %c0_0] : memref<8x16xbf16, #tpu.memory_space<vmem>>, vector<8x16xbf16>
    %c0_1 = arith.constant 0 : index
    %c0_2 = arith.constant 0 : index
    %1 = vector.load %arg2[%c0_1, %c0_2] : memref<16x256xbf16, #tpu.memory_space<vmem>>, vector<16x256xbf16>
    %cst = arith.constant dense<0.000000e+00> : vector<8x256xf32>
    %2 = tpu.matmul %0, %1, %cst {dimension_numbers = #tpu.dot_dimension_numbers<[1], [0], [0], [1], [0, 0, 1, 1], [], []>} : vector<8x16xbf16>, vector<16x256xbf16>, vector<8x256xf32> -> vector<8x256xf32>
    %c0_3 = arith.constant 0 : index
    %c0_4 = arith.constant 0 : index
    %3 = vector.load %arg3[%c0_3, %c0_4] : memref<1x256xf32, #tpu.memory_space<vmem>>, vector<1x256xf32>
    %4 = vector.broadcast %3 : vector<1x256xf32> to vector<8x256xf32>
    %5 = arith.addf %2, %4 : vector<8x256xf32>
    %cst_5 = arith.constant 0.000000e+00 : f32
    %6 = vector.broadcast %cst_5 : f32 to vector<8x256xf32>
    %7 = arith.maximumf %5, %6 : vector<8x256xf32>
    %8 = arith.truncf %7 : vector<8x256xf32> to vector<8x256xbf16>
    %c0_6 = arith.constant 0 : index
    %c0_7 = arith.constant 0 : index
    %9 = vector.load %arg4[%c0_6, %c0_7] : memref<256x256xbf16, #tpu.memory_space<vmem>>, vector<256x256xbf16>
    %cst_8 = arith.constant dense<0.000000e+00> : vector<8x256xf32>
    %10 = tpu.matmul %8, %9, %cst_8 {dimension_numbers = #tpu.dot_dimension_numbers<[1], [0], [0], [1], [0, 0, 1, 1], [], []>} : vector<8x256xbf16>, vector<256x256xbf16>, vector<8x256xf32> -> vector<8x256xf32>
    %c0_9 = arith.constant 0 : index
    %c0_10 = arith.constant 0 : index
    %11 = vector.load %arg5[%c0_9, %c0_10] : memref<1x256xf32, #tpu.memory_space<vmem>>, vector<1x256xf32>
    %12 = vector.broadcast %11 : vector<1x256xf32> to vector<8x256xf32>
    %13 = arith.addf %10, %12 : vector<8x256xf32>
    %cst_11 = arith.constant 0.000000e+00 : f32
    %14 = vector.broadcast %cst_11 : f32 to vector<8x256xf32>
    %15 = arith.maximumf %13, %14 : vector<8x256xf32>
    %16 = arith.truncf %15 : vector<8x256xf32> to vector<8x256xbf16>
    %c0_12 = arith.constant 0 : index
    %c0_13 = arith.constant 0 : index
    %17 = vector.load %arg6[%c0_12, %c0_13] : memref<256x128xbf16, #tpu.memory_space<vmem>>, vector<256x128xbf16>
    %cst_14 = arith.constant dense<0.000000e+00> : vector<8x128xf32>
    %18 = tpu.matmul %16, %17, %cst_14 {dimension_numbers = #tpu.dot_dimension_numbers<[1], [0], [0], [1], [0, 0, 1, 1], [], []>} : vector<8x256xbf16>, vector<256x128xbf16>, vector<8x128xf32> -> vector<8x128xf32>
    %c0_15 = arith.constant 0 : index
    %c0_16 = arith.constant 0 : index
    %19 = vector.load %arg7[%c0_15, %c0_16] : memref<1x128xf32, #tpu.memory_space<vmem>>, vector<1x128xf32>
    %20 = vector.broadcast %19 : vector<1x128xf32> to vector<8x128xf32>
    %21 = arith.addf %18, %20 : vector<8x128xf32>
    %22 = math.tanh %21 : vector<8x128xf32>
    %cst_17 = arith.constant 8.000000e-01 : f32
    %23 = vector.broadcast %cst_17 : f32 to vector<8x128xf32>
    %24 = arith.mulf %22, %23 : vector<8x128xf32>
    %cst_18 = arith.constant 0.000000e+00 : f32
    %25 = vector.broadcast %cst_18 : f32 to vector<8x128xf32>
    %26 = arith.addf %24, %25 : vector<8x128xf32>
    %27 = arith.negf %22 : vector<8x128xf32>
    %28 = math.exp %27 : vector<8x128xf32>
    %cst_19 = arith.constant 1.000000e+00 : f32
    %29 = vector.broadcast %cst_19 : f32 to vector<8x128xf32>
    %30 = arith.addf %29, %28 : vector<8x128xf32>
    %31 = arith.divf %29, %30 : vector<8x128xf32>
    %cst_20 = arith.constant 4.000000e-01 : f32
    %32 = vector.broadcast %cst_20 : f32 to vector<8x128xf32>
    %33 = arith.mulf %31, %32 : vector<8x128xf32>
    %cst_21 = arith.constant 6.000000e-01 : f32
    %34 = vector.broadcast %cst_21 : f32 to vector<8x128xf32>
    %35 = arith.addf %33, %34 : vector<8x128xf32>
    %36 = tpu.iota {dimensions = array<i32: 1>} : vector<8x128xi32>
    %c0_i32 = arith.constant 0 : i32
    %37 = vector.broadcast %c0_i32 : i32 to vector<8x128xi32>
    %38 = arith.cmpi eq, %36, %37 : vector<8x128xi32>
    %39 = arith.select %38, %26, %35 : vector<8x128xi1>, vector<8x128xf32>
    %c0_22 = arith.constant 0 : index
    %c0_23 = arith.constant 0 : index
    %40 = vector.load %arg8[%c0_22, %c0_23] : memref<8x128xf32, #tpu.memory_space<vmem>>, vector<8x128xf32>
    tpu.vector_store %arg8[%c0_22, %c0_23], %39 {strides = array<i32>} : memref<8x128xf32, #tpu.memory_space<vmem>>, vector<8x128xf32>,
    return
  }
  func.func @transform_0(%arg0: i32) -> (i32, i32) {
    %c0_i32 = arith.constant 0 : i32
    %c0_i32_0 = arith.constant 0 : i32
    return %arg0, %c0_i32 : i32, i32
  }
  func.func @transform_1(%arg0: i32) -> (i32, i32) {
    %c0_i32 = arith.constant 0 : i32
    %c0_i32_0 = arith.constant 0 : i32
    %c0_i32_1 = arith.constant 0 : i32
    return %c0_i32, %c0_i32_0 : i32, i32
  }
  func.func @transform_2(%arg0: i32) -> (i32, i32) {
    %c0_i32 = arith.constant 0 : i32
    %c0_i32_0 = arith.constant 0 : i32
    %c0_i32_1 = arith.constant 0 : i32
    return %c0_i32, %c0_i32_0 : i32, i32
  }
  func.func @transform_3(%arg0: i32) -> (i32, i32) {
    %c0_i32 = arith.constant 0 : i32
    %c0_i32_0 = arith.constant 0 : i32
    %c0_i32_1 = arith.constant 0 : i32
    return %c0_i32, %c0_i32_0 : i32, i32
  }
  func.func @transform_4(%arg0: i32) -> (i32, i32) {
    %c0_i32 = arith.constant 0 : i32
    %c0_i32_0 = arith.constant 0 : i32
    %c0_i32_1 = arith.constant 0 : i32
    return %c0_i32, %c0_i32_0 : i32, i32
  }
  func.func @transform_5(%arg0: i32) -> (i32, i32) {
    %c0_i32 = arith.constant 0 : i32
    %c0_i32_0 = arith.constant 0 : i32
    %c0_i32_1 = arith.constant 0 : i32
    return %c0_i32, %c0_i32_0 : i32, i32
  }
  func.func @transform_6(%arg0: i32) -> (i32, i32) {
    %c0_i32 = arith.constant 0 : i32
    %c0_i32_0 = arith.constant 0 : i32
    %c0_i32_1 = arith.constant 0 : i32
    return %c0_i32, %c0_i32_0 : i32, i32
  }
  func.func @transform_7(%arg0: i32) -> (i32, i32) {
    %c0_i32 = arith.constant 0 : i32
    %c0_i32_0 = arith.constant 0 : i32
    return %arg0, %c0_i32 : i32, i32
  }
}

</mosaic_0001>

<bundles_post_ra>
// kernel: tpu_custom_call.1
= control target key start
LH: loop header
LB: loop body
LE: loop exit
PB: predicated region body
PF: predicated region fallthrough
CT: control target
= control target key end

     0   :  { %12 = vsyncpa [#allocation3], 0  ;;  %s1013_s0 = inlined_call_operand.hbm [shape: bf16[8,16], index: 0, kind: input, shape index: {}]   ;;  %s1014_s1 = inlined_call_operand.hbm [shape: bf16[16,256], index: 1, kind: input, shape index: {}]   ;;  %s1015_s2 = inlined_call_operand.vmem [shape: f32[1,256], index: 2, kind: input, shape index: {}]   ;;  %s1016_s3 = inlined_call_operand.hbm [shape: bf16[256,256], index: 3, kind: input, shape index: {}]   ;;  %s1017_s4 = inlined_call_operand.vmem [shape: f32[1,256], index: 4, kind: input, shape index: {}]   ;;  %s1018_s5 = inlined_call_operand.hbm [shape: bf16[256,128], index: 5, kind: input, shape index: {}]   ;;  %s1019_s6 = inlined_call_operand.vmem [shape: f32[1,128], index: 6, kind: input, shape index: {}]   ;;  %s1020_s7 = inlined_call_operand.hbm [shape: f32[8,128], index: 7, kind: output, shape index: {}]  }
   0x1   :  { %13 = vsyncpa [#allocation6], 0 }
   0x2   :  { %14 = vsyncpa [#allocation9], 0 }
   0x3   :  { %15 = vsyncpa [#allocation4], 0  ;;  %s888_s24 = smov [#allocation5]   ;;  %s770_s28 = scalar_lea.hbm %s1014_s1, 256 }
   0x4   :  { %s31_s25 = sshll.u32 %s888_s24, 4  ;;  %p771_p0 = scmp.ne.s32.totalorder %s1014_s1, %s770_s28  ;;  %s32_s25 = int_to_ptr.vmem [resolvable:$true] %s31_s25 }
   0x5   :  { %p774_p1 = scmp.lt.u32.totalorder %s770_s28, %s1014_s1 }
   0x7   :  { %p776_p2 = pnand %p774_p1, %p771_p0 }
   0x9   :  { %779 = shalt.err (!%p776_p2)
}
   0xa   :  { %s780_s10 = scalar_lea.vmem %s32_s25, 256  ;;  %p785_p4 = scmp.lt.s32.totalorder %s32_s25, %s32_s25 }
   0xb   :  { %p781_p3 = scmp.ne.s32.totalorder %s32_s25, %s780_s10  ;;  %p786_p5 = scmp.lt.s32.totalorder %s780_s10, %s780_s10 }
   0xd   :  { %p787_p6 = por %p786_p5, %p785_p4 }
   0xf   :  { %p788_p7 = pnand %p787_p6, %p781_p3 }
  0x11   :  { %791 = shalt.err (!%p788_p7)
}
  0x12   :  { %s889_s11 = smov 128   ;;  %s890_s12 = smov 8  }
  0x13   :  { %37 = dma.hbm_to_vmem [thread:$0]  %s1014_s1, 256, %s32_s25, [#allocation6], %s889_s11, %s889_s11, %s890_s12  }
  0x14   :  { %s891_s15 = smov [#allocation2]   ;;  %s892_s17 = smov [#allocation7]  }
  0x15   :  { %s22_s16 = sshll.u32 %s891_s15, 4  ;;  %s45_s18 = sshll.u32 %s892_s17, 4  ;;  %s23_s16 = int_to_ptr.vmem [resolvable:$true] %s22_s16  ;;  %s46_s18 = int_to_ptr.vmem [resolvable:$true] %s45_s18 }
  0x16   :  { %s792_s21 = scalar_lea.hbm %s1013_s0, 64 }
  0x17   :  { %p793_p8 = scmp.ne.s32.totalorder %s1013_s0, %s792_s21  ;;  %p796_p9 = scmp.lt.u32.totalorder %s792_s21, %s1013_s0 }
  0x19   :  { %p798_p10 = pnand %p796_p9, %p793_p8 }
  0x1b   :  { %801 = shalt.err (!%p798_p10)
}
  0x1c   :  { %s802_s1 = scalar_lea.vmem %s23_s16, 64  ;;  %p807_p12 = scmp.lt.s32.totalorder %s23_s16, %s23_s16 }
  0x1d   :  { %p803_p11 = scmp.ne.s32.totalorder %s23_s16, %s802_s1  ;;  %p808_p13 = scmp.lt.s32.totalorder %s802_s1, %s802_s1 }
  0x1f   :  { %p809_p0 = por %p808_p13, %p807_p12 }
  0x21   :  { %p810_p1 = pnand %p809_p0, %p803_p11 }
  0x23   :  { %813 = shalt.err (!%p810_p1)
}
  0x24   :  { %25 = dma.hbm_to_vmem [thread:$0]  %s1013_s0, 64, %s23_s16, [#allocation3]  }
  0x25   :  { %s814_s30 = scalar_lea.hbm %s1016_s3, 4096 }
  0x26   :  { %p815_p2 = scmp.ne.s32.totalorder %s1016_s3, %s814_s30  ;;  %p818_p3 = scmp.lt.u32.totalorder %s814_s30, %s1016_s3 }
  0x28   :  { %p820_p4 = pnand %p818_p3, %p815_p2 }
  0x2a   :  { %823 = shalt.err (!%p820_p4)
}
  0x2b   :  { %s824_s14 = scalar_lea.vmem %s46_s18, 4096  ;;  %p829_p6 = scmp.lt.s32.totalorder %s46_s18, %s46_s18 }
  0x2c   :  { %p825_p5 = scmp.ne.s32.totalorder %s46_s18, %s824_s14  ;;  %p830_p7 = scmp.lt.s32.totalorder %s824_s14, %s824_s14 }
  0x2e   :  { %p831_p8 = por %p830_p7, %p829_p6 }
  0x30   :  { %p832_p9 = pnand %p831_p8, %p825_p5 }
  0x32   :  { %835 = shalt.err (!%p832_p9)
}
  0x33   :  { %51 = dma.hbm_to_vmem [thread:$0]  %s1016_s3, 4096, %s46_s18, [#allocation6], %s889_s11, %s889_s11, %s890_s12  }
  0x34   :  { %s893_s16 = smov [#allocation8]   ;;  %s836_s21 = scalar_lea.hbm %s1018_s5, 2048 }
  0x35   :  { %s59_s17 = sshll.u32 %s893_s16, 4  ;;  %p837_p10 = scmp.ne.s32.totalorder %s1018_s5, %s836_s21  ;;  %s60_s17 = int_to_ptr.vmem [resolvable:$true] %s59_s17 }
  0x36   :  { %p840_p11 = scmp.lt.u32.totalorder %s836_s21, %s1018_s5 }
  0x38   :  { %p842_p12 = pnand %p840_p11, %p837_p10 }
  0x3a   :  { %845 = shalt.err (!%p842_p12)
}
  0x3b   :  { %s846_s1 = scalar_lea.vmem %s60_s17, 2048  ;;  %p851_p0 = scmp.lt.s32.totalorder %s60_s17, %s60_s17 }
  0x3c   :  { %p847_p13 = scmp.ne.s32.totalorder %s60_s17, %s846_s1  ;;  %p852_p1 = scmp.lt.s32.totalorder %s846_s1, %s846_s1 }
  0x3e   :  { %p853_p2 = por %p852_p1, %p851_p0 }
  0x40   :  { %p854_p3 = pnand %p853_p2, %p847_p13 }
  0x42   :  { %857 = shalt.err (!%p854_p3)
}
  0x43   :  { %s894_s3 = smov 64   ;;  %s895_s11 = smov 4  }
  0x44   :  { %65 = dma.hbm_to_vmem [thread:$0]  %s1018_s5, 2048, %s60_s17, [#allocation9], %s894_s3, %s894_s3, %s895_s11  }
  0x45   :  { %880 = dma.done.wait [#allocation3], 64  }
  0x46   :  { %881 = vsyncadd [#allocation3], 4294967232 }
  0x47   :  { %882 = dma.done.wait [#allocation6], 4352  }
  0x48   :  { %883 = vsyncadd [#allocation6], 4294962944 }
  0x49   :  { %884 = dma.done.wait [#allocation9], 2048  }
  0x4a   :  { %885 = vsyncadd [#allocation9], 4294965248  ;;  %v896_v0 = vmov 0   ;;  %v697_v1 = vld [vmem:[#allocation5 + $0x4] ss:$8 sps:$4 sm:$0xff]   ;;  %vm106_vm0 = vcmask 130048   ;;  %v86_v48 = vlaneseq }
  0x4b   :  { %142 = vmatprep.mubr.bf16.mxu0 %v896_v0  ;;  %v699_v2 = vld [vmem:[#allocation5] ss:$8 sps:$4 sm:$0xff]   ;;  %v81_v3 = vld [vmem:[#allocation2] sm:$0xf]  ;;  %110 = vmatprep.subr.bf16.mxu0 %v697_v1  ;;  %v702_v5 = vld [vmem:[#allocation7] ss:$8 sps:$4 sm:$0xff]  }
  0x4c   :  { %v700_v4 = vld [vmem:[#allocation7 + $0x4] ss:$8 sps:$4 sm:$0xff]   ;;  %111 = vmatpush1.bf16.msra.mxu0 %v699_v2  ;;  %v703_v6 = vld [vmem:[#allocation7 + $0x14] ss:$8 sps:$4 sm:$0xff]   ;;  %v705_v7 = vld [vmem:[#allocation7 + $0x10] ss:$8 sps:$4 sm:$0xff]  }
  0x4d   :  { %359 = vmatprep.subr.bf16.mxu1 %v700_v4  ;;  %v706_v8 = vld [vmem:[#allocation7 + $0x24] ss:$8 sps:$4 sm:$0xff]   ;;  %v708_v9 = vld [vmem:[#allocation7 + $0x20] ss:$8 sps:$4 sm:$0xff]   ;;  %v709_v10 = vld [vmem:[#allocation7 + $0x34] ss:$8 sps:$4 sm:$0xff]  }
  0x4e   :  { %360 = vmatpush1.bf16.msra.mxu1 %v702_v5  ;;  %v711_v11 = vld [vmem:[#allocation7 + $0x30] ss:$8 sps:$4 sm:$0xff]   ;;  %v712_v12 = vld [vmem:[#allocation7 + $0x44] ss:$8 sps:$4 sm:$0xff]   ;;  %v714_v13 = vld [vmem:[#allocation7 + $0x40] ss:$8 sps:$4 sm:$0xff]  }
  0x4f   :  { %614 = vmatmul.mubr.msk.bf16.vlgmr.msra.gmra.mrb[0].mxu0 %vm106_vm0, %v81_v3  ;;  %361 = vmatprep.subr.bf16.mxu1 %v703_v6  ;;  %v715_v14 = vld [vmem:[#allocation7 + $0x54] ss:$8 sps:$4 sm:$0xff]   ;;  %v717_v15 = vld [vmem:[#allocation7 + $0x50] ss:$8 sps:$4 sm:$0xff]   ;;  %v718_v16 = vld [vmem:[#allocation7 + $0x64] ss:$8 sps:$4 sm:$0xff]  }
  0x50   :  { %v720_v17 = vld [vmem:[#allocation7 + $0x60] ss:$8 sps:$4 sm:$0xff]   ;;  %v721_v18 = vld [vmem:[#allocation7 + $0x74] ss:$8 sps:$4 sm:$0xff]   ;;  %v723_v19 = vld [vmem:[#allocation7 + $0x70] ss:$8 sps:$4 sm:$0xff]  }
  0x51   :  { %v724_v20 = vld [vmem:[#allocation7 + $0x84] ss:$8 sps:$4 sm:$0xff]   ;;  %v726_v21 = vld [vmem:[#allocation7 + $0x80] ss:$8 sps:$4 sm:$0xff]   ;;  %v727_v22 = vld [vmem:[#allocation7 + $0x94] ss:$8 sps:$4 sm:$0xff]  }
  0x52   :  { %362 = vmatpush1.bf16.msra.mxu1 %v705_v7  ;;  %v729_v23 = vld [vmem:[#allocation7 + $0x90] ss:$8 sps:$4 sm:$0xff]   ;;  %v730_v24 = vld [vmem:[#allocation7 + $0xa4] ss:$8 sps:$4 sm:$0xff]   ;;  %v732_v25 = vld [vmem:[#allocation7 + $0xa0] ss:$8 sps:$4 sm:$0xff]  }
  0x53   :  { %363 = vmatprep.subr.bf16.mxu1 %v706_v8  ;;  %v733_v26 = vld [vmem:[#allocation7 + $0xb4] ss:$8 sps:$4 sm:$0xff]   ;;  %v735_v27 = vld [vmem:[#allocation7 + $0xb0] ss:$8 sps:$4 sm:$0xff]   ;;  %v736_v28 = vld [vmem:[#allocation7 + $0xc4] ss:$8 sps:$4 sm:$0xff]  }
  0x54   :  { %v738_v29 = vld [vmem:[#allocation7 + $0xc0] ss:$8 sps:$4 sm:$0xff]   ;;  %v739_v30 = vld [vmem:[#allocation7 + $0xd4] ss:$8 sps:$4 sm:$0xff]   ;;  %v741_v31 = vld [vmem:[#allocation7 + $0xd0] ss:$8 sps:$4 sm:$0xff]  }
  0x55   :  { %v742_v32 = vld [vmem:[#allocation7 + $0xe4] ss:$8 sps:$4 sm:$0xff]   ;;  %v744_v33 = vld [vmem:[#allocation7 + $0xe0] ss:$8 sps:$4 sm:$0xff]   ;;  %v745_v34 = vld [vmem:[#allocation7 + $0xf4] ss:$8 sps:$4 sm:$0xff]  }
  0x56   :  { %364 = vmatpush1.bf16.msra.mxu1 %v708_v9  ;;  %v747_v35 = vld [vmem:[#allocation7 + $0xf0] ss:$8 sps:$4 sm:$0xff]   ;;  %v748_v36 = vld [vmem:[#allocation8 + $0x40] sm:$0xff]   ;;  %v750_v38 = vld [vmem:[#allocation8 + $0x48] sm:$0xff]   ;;  %v87_v49 = vshrl.u32 %v86_v48, 7 }
  0x57   :  { %365 = vmatprep.subr.bf16.mxu1 %v709_v10  ;;  %v749_v37 = vld [vmem:[#allocation8] sm:$0xff]   ;;  %665 = vmatprep.subr.bf16.mxu0 %v748_v36  ;;  %v751_v39 = vld [vmem:[#allocation8 + $0x8] sm:$0xff]   ;;  %v752_v40 = vld [vmem:[#allocation8 + $0x50] sm:$0xff]  }
  0x58   :  { %666 = vmatpush3.bf16.msra.mxu0 %v749_v37  ;;  %v753_v41 = vld [vmem:[#allocation8 + $0x10] sm:$0xff]   ;;  %v754_v42 = vld [vmem:[#allocation8 + $0x58] sm:$0xff]   ;;  %v756_v44 = vld [vmem:[#allocation8 + $0x60] sm:$0xff]   ;;  %v88_v50 = vsub.s32 0, %v87_v49  ;;  %v92_v52 = vsub.s32 1, %v87_v49 }
  0x59   :  { %667 = vmatprep.subr.bf16.mxu0 %v750_v38  ;;  %v755_v43 = vld [vmem:[#allocation8 + $0x18] sm:$0xff]   ;;  %v757_v45 = vld [vmem:[#allocation8 + $0x20] sm:$0xff]   ;;  %v758_v46 = vld [vmem:[#allocation8 + $0x68] sm:$0xff]  }
  0x5a   :  { %366 = vmatpush1.bf16.msra.mxu1 %v711_v11  ;;  %v759_v47 = vld [vmem:[#allocation8 + $0x28] sm:$0xff]   ;;  %v760_v1 = vld [vmem:[#allocation8 + $0x70] sm:$0xff]   ;;  %v762_v3 = vld [vmem:[#allocation8 + $0x78] sm:$0xff]  }
  0x5b   :  { %367 = vmatprep.subr.bf16.mxu1 %v712_v12  ;;  %v84_v51 = vld [vmem:[%s1015_s2] sm:$0x3]  ;;  %v761_v2 = vld [vmem:[#allocation8 + $0x30] sm:$0xff]   ;;  %v763_v4 = vld [vmem:[#allocation8 + $0x38] sm:$0xff]  }
  0x5c   :  { %668 = vmatpush3.bf16.msra.mxu0 %v751_v39  ;;  %v89_v53 = vrot.slane %v84_v51, %v88_v50  ;;  %v93_v54 = vrot.slane %v84_v51, %v92_v52  ;;  %v187_v5 = vld [vmem:[%s1017_s4] sm:$0x3]  ;;  %s897_s4 = smov [#allocation10]  }
  0x5d   :  { %669 = vmatprep.subr.bf16.mxu0 %v752_v40  ;;  %v192_v6 = vrot.slane %v187_v5, %v88_v50  ;;  %v196_v7 = vrot.slane %v187_v5, %v92_v52  ;;  %s601_s30 = sshll.u32 %s897_s4, 4  ;;  %s602_s30 = int_to_ptr.vmem [resolvable:$true] %s601_s30 }
  0x5e   :  { %368 = vmatpush1.bf16.msra.mxu1 %v714_v13  ;;  %p863_p5 = scmp.lt.s32.totalorder %s602_s30, %s602_s30 }
  0x5f   :  { %369 = vmatprep.subr.bf16.mxu1 %v715_v14 }
  0x60   :  { %670 = vmatpush3.bf16.msra.mxu0 %v753_v41 }
  0x61   :  { %671 = vmatprep.subr.bf16.mxu0 %v754_v42 }
  0x62   :  { %370 = vmatpush1.bf16.msra.mxu1 %v717_v15 }
  0x63   :  { %371 = vmatprep.subr.bf16.mxu1 %v718_v16 }
  0x64   :  { %672 = vmatpush3.bf16.msra.mxu0 %v755_v43 }
  0x65   :  { %673 = vmatprep.subr.bf16.mxu0 %v756_v44 }
  0x66   :  { %372 = vmatpush1.bf16.msra.mxu1 %v720_v17 }
  0x67   :  { %373 = vmatprep.subr.bf16.mxu1 %v721_v18 }
  0x68   :  { %674 = vmatpush3.bf16.msra.mxu0 %v757_v45 }
  0x69   :  { %675 = vmatprep.subr.bf16.mxu0 %v758_v46 }
  0x6a   :  { %374 = vmatpush1.bf16.msra.mxu1 %v723_v19  ;;  %v647_v19 = vld [vmem:[%s1019_s6] ss:$0 sm:$0xff]  ;;  %s858_s6 = scalar_lea.vmem %s602_s30, 128 }
  0x6b   :  { %375 = vmatprep.subr.bf16.mxu1 %v724_v20  ;;  %p859_p4 = scmp.ne.s32.totalorder %s602_s30, %s858_s6  ;;  %p864_p6 = scmp.lt.s32.totalorder %s858_s6, %s858_s6 }
  0x6c   :  { %676 = vmatpush3.bf16.msra.mxu0 %v759_v47 }
  0x6d   :  { %677 = vmatprep.subr.bf16.mxu0 %v760_v1  ;;  %p865_p7 = por %p864_p6, %p863_p5 }
  0x6e   :  { %376 = vmatpush1.bf16.msra.mxu1 %v726_v21 }
  0x6f   :  { %377 = vmatprep.subr.bf16.mxu1 %v727_v22  ;;  %p866_p8 = pnand %p865_p7, %p859_p4 }
  0x70   :  { %678 = vmatpush3.bf16.msra.mxu0 %v761_v2 }
  0x71   :  { %679 = vmatprep.subr.bf16.mxu0 %v762_v3 }
  0x72   :  { %378 = vmatpush1.bf16.msra.mxu1 %v729_v23 }
  0x73   :  { %379 = vmatprep.subr.bf16.mxu1 %v730_v24 }
  0x74   :  { %680 = vmatpush3.bf16.msra.mxu0 %v763_v4 }
  0x76   :  { %380 = vmatpush1.bf16.msra.mxu1 %v732_v25 }
  0x77   :  { %381 = vmatprep.subr.bf16.mxu1 %v733_v26 }
  0x7a   :  { %382 = vmatpush1.bf16.msra.mxu1 %v735_v27 }
  0x7b   :  { %383 = vmatprep.subr.bf16.mxu1 %v736_v28 }
  0x7e   :  { %384 = vmatpush1.bf16.msra.mxu1 %v738_v29  ;;  %v591_v29 = vand.u32 127, %v86_v48 }
  0x7f   :  { %385 = vmatprep.subr.bf16.mxu1 %v739_v30 }
  0x80   :  { %vm592_vm1 = vcmp.eq.s32.totalorder %v591_v29, 0 }
  0x82   :  { %386 = vmatpush1.bf16.msra.mxu1 %v741_v31 }
  0x83   :  { %387 = vmatprep.subr.bf16.mxu1 %v742_v32 }
  0x86   :  { %388 = vmatpush1.bf16.msra.mxu1 %v744_v33 }
  0x87   :  { %389 = vmatprep.subr.bf16.mxu1 %v745_v34 }
  0x8a   :  { %390 = vmatpush1.bf16.msra.mxu1 %v747_v35 }
 0x122   :  { %v144_v55 = vpop.f32.mrb[0].mxu0 }
 0x123   :  { %v145_v56 = vadd.f32 %v144_v55, %v89_v53  ;;  %v146_v57 = vpop.f32.mrb[1].mxu0 }
 0x124   :  { %v147_v58 = vadd.f32 %v146_v57, %v93_v54  ;;  %v148_v59 = vpop.f32.mrb[2].mxu0 }
 0x125   :  { %v151_v60 = vmax.f32 %v145_v56, 0.0  ;;  %v149_v61 = vpop.f32.mrb[3].mxu0 }
 0x126   :  { %v152_v62 = vmax.f32 %v147_v58, 0.0 }
 0x127   :  { %v153_v0 = vpack.c.bf16 %v151_v60, %v151_v60 }
 0x128   :  { %v154_v63 = vpack.c.bf16 %v152_v62, %v152_v62 }
 0x12a   :  { %391 = vmatprep.mubr.bf16.mxu1 %v154_v63 }
 0x12b   :  { %392 = vmatmul.mubr.bf16.vlgmr.msra.gmra.mrb[0].mxu1 %v153_v0 }
 0x1fe   :  { %v393_v8 = vpop.f32.mrb[0].mxu1 }
 0x1ff   :  { %v394_v9 = vadd.f32 %v393_v8, %v192_v6  ;;  %v395_v10 = vpop.f32.mrb[1].mxu1 }
 0x200   :  { %v396_v11 = vadd.f32 %v395_v10, %v196_v7  ;;  %v397_v12 = vpop.f32.mrb[2].mxu1 }
 0x201   :  { %v400_v13 = vmax.f32 %v394_v9, 0.0  ;;  %v398_v14 = vpop.f32.mrb[3].mxu1 }
 0x202   :  { %v401_v15 = vmax.f32 %v396_v11, 0.0 }
 0x203   :  { %v402_v17 = vpack.c.bf16 %v400_v13, %v400_v13 }
 0x204   :  { %v403_v16 = vpack.c.bf16 %v401_v15, %v401_v15 }
 0x206   :  { %571 = vmatprep.mubr.bf16.mxu0 %v403_v16 }
 0x207   :  { %572 = vmatmul.mubr.bf16.vlgmr.msra.gmra.mrb[4].mxu0 %v402_v17 }
 0x2da   :  { %v681_v18 = vpop.f32.mrb[4].mxu0 }
 0x2db   :  { %v682_v20 = vpop.f32.mrb[5].mxu0 }
 0x2dc   :  { %v683_v21 = vadd.f32 %v682_v20, %v681_v18  ;;  %v684_v22 = vpop.f32.mrb[6].mxu0 }
 0x2dd   :  { %v685_v23 = vpop.f32.mrb[7].mxu0 }
 0x2de   :  { %v574_v24 = vadd.f32 %v683_v21, %v647_v19 }
 0x2e0   :  { %764 = vtanh.f32 %v574_v24 }
 0x2ea   :  { %v765_v25 = vpop.eup %764 }
 0x2eb   :  { %v664_v26 = vmul.f32 -1.442695, %v765_v25  ;;  %v580_v32 = vmul.f32 0.8, %v765_v25 }
 0x2ed   :  { %766 = vpow2.f32 %v664_v26 }
 0x2f7   :  { %v767_v27 = vpop.eup %766 }
 0x2f8   :  { %v585_v28 = vadd.f32 1.0, %v767_v27 }
 0x2fa   :  { %768 = vrcp.f32 %v585_v28 }
 0x304   :  { %v769_v30 = vpop.eup %768 }
 0x305   :  { %v588_v31 = vmul.f32 0.4, %v769_v30 }
 0x307   :  { %v589_v33 = vadd.f32 0.6, %v588_v31 }
 0x309   :  { %v593_v34 = vsel %vm592_vm1, %v580_v32, %v589_v33 }
 0x30a   :  { %594 = vst [vmem:[#allocation10] sm:$0xff] %v593_v34 }
 0x30b   :  { %869 = shalt.err (!%p866_p8)
}
 0x30c   :  { %s870_s10 = scalar_lea.hbm %s1020_s7, 128 }
 0x30d   :  { %p871_p9 = scmp.ne.s32.totalorder %s1020_s7, %s870_s10  ;;  %p874_p10 = scmp.lt.u32.totalorder %s870_s10, %s1020_s7 }
 0x30f   :  { %p876_p11 = pnand %p874_p10, %p871_p9 }
 0x311   :  { %879 = shalt.err (!%p876_p11)
}
 0x312   :  { %604 = dma.vmem_to_hbm [thread:$0]  %s602_s30, 128, %s1020_s7, [#allocation4]  }
 0x313   :  { %886 = dma.done.wait [#allocation4], 128  }
 0x314   :  { %887 = vsyncadd [#allocation4], 4294967168 }
 0x315   :  { %608 = vsyncpa [#allocation3], 1 }
 0x316   :  { %609 = vsyncpa [#allocation6], 1 }
 0x317   :  { %610 = vsyncpa [#allocation9], 1 }
 0x318   :  { %611 = vsyncpa [#allocation4], 1 }

</bundles_post_ra>
